<compile_context>
chip_gen: v5e
topology: v5e:2x2
jax: 0.10.0
libtpu: 0.0.40
codegen_flags: <defaults>
</compile_context>

<pallas_src>
import functools

import jax
import jax.numpy as jnp
from jax.experimental import pallas as pl
from jax.experimental.pallas import tpu as pltpu

_MIB = 1024 * 1024


# ----------------------------------------------------------------------------
# Regime A: whole H*W in one tile, Nb batch elements per grid step.
# ----------------------------------------------------------------------------
def _ca_single_tile_kernel(x_ref, w1t_ref, w2t_ref, o_ref, *, inv_hw):
    x = x_ref[...]                                           # (Nb, C, HW) native dtype
    # avg pool (sum in f32) and max pool (native dtype, exact under cast to f32)
    avg = jnp.sum(x.astype(jnp.float32), axis=-1) * jnp.float32(inv_hw)   # (Nb, C)
    mx = jnp.max(x, axis=-1).astype(jnp.float32)                          # (Nb, C)

    w1t = w1t_ref[...].astype(jnp.float32)                   # (C, hidden)
    w2t = w2t_ref[...].astype(jnp.float32)                   # (hidden, C)

    # sharedMLP(avg) + sharedMLP(max) == (relu(avg@W1^T) + relu(max@W1^T)) @ W2^T
    h = (jnp.maximum(jnp.dot(avg, w1t, preferred_element_type=jnp.float32), 0.0)
         + jnp.maximum(jnp.dot(mx, w1t, preferred_element_type=jnp.float32), 0.0))
    y = jnp.dot(h, w2t, preferred_element_type=jnp.float32)  # (Nb, C)
    att = 1.0 / (1.0 + jnp.exp(-y))                          # sigmoid
    o_ref[...] = att[:, :, None].astype(o_ref.dtype)         # (Nb, C, 1)


# ----------------------------------------------------------------------------
# Regime B: spatial tiling with accumulators; mask only on the last tile.
# ----------------------------------------------------------------------------
def _ca_tiled_kernel(x_ref, w1_ref, w2_ref, o_ref, sum_ref, max_ref,
                     *, hw, tile_hw, mask_tail):
    k = pl.program_id(1)             # spatial-tile index (reduction axis)
    nk = pl.num_programs(1)

    def partials(masked):
        x = x_ref[0]                                         # (C, THW) native dtype
        if masked:
            lane = jax.lax.broadcasted_iota(jnp.int32, x.shape, 1)
            valid = (k * tile_hw + lane) < hw
            xs = jnp.where(valid, x.astype(jnp.float32), 0.0)
            xm = jnp.where(valid, x, jnp.asarray(-jnp.inf, dtype=x.dtype))
        else:
            xs = x.astype(jnp.float32)
            xm = x
        psum = jnp.sum(xs, axis=-1, keepdims=True)           # (C, 1) f32
        pmax = jnp.max(xm, axis=-1, keepdims=True).astype(jnp.float32)
        return psum, pmax

    def accumulate(masked):
        psum, pmax = partials(masked)

        @pl.when(k == 0)
        def _():
            sum_ref[...] = psum
            max_ref[...] = pmax

        @pl.when(k > 0)
        def _():
            sum_ref[...] = sum_ref[...] + psum
            max_ref[...] = jnp.maximum(max_ref[...], pmax)

    def finalize():
        w1 = w1_ref[...].astype(jnp.float32)                 # (hidden, C)
        w2 = w2_ref[...].astype(jnp.float32)                 # (C, hidden)
        avg = sum_ref[...] * jnp.float32(1.0 / hw)           # (C, 1)  adaptive avg pool
        mx = max_ref[...]                                    # (C, 1)  adaptive max pool
        h = (jnp.maximum(jnp.dot(w1, avg, preferred_element_type=jnp.float32), 0.0)
             + jnp.maximum(jnp.dot(w1, mx, preferred_element_type=jnp.float32), 0.0))
        y = jnp.dot(w2, h, preferred_element_type=jnp.float32)       # (C, 1)
        att = 1.0 / (1.0 + jnp.exp(-y))                      # sigmoid
        o_ref[...] = att[None, :, :].astype(o_ref.dtype)     # (1, C, 1)

    if mask_tail:
        # Hot path: every tile except the last is unmasked (no iota/compare/select).
        @pl.when(k < nk - 1)
        def _():
            accumulate(False)

        @pl.when(k == nk - 1)
        def _():
            accumulate(True)
            finalize()
    else:
        accumulate(False)

        @pl.when(k == nk - 1)
        def _():
            finalize()


# ----------------------------------------------------------------------------
# Tiling heuristics
# ----------------------------------------------------------------------------
def _pick_spatial_tile(hw: int, c: int, budget_bytes: int):
    """Lane-dense spatial tile (multiple of 128), budgeted in f32 bytes."""
    lane_budget = max(128, (budget_bytes // (c * 4)) // 128 * 128)
    tile = max(128, min((hw // 128) * 128, lane_budget))
    # Prefer a divisor of hw (no tail mask) if we don't lose more than 2x tile size.
    t = tile
    while t >= max(128, tile // 2):
        if hw % t == 0:
            return t, False
        t -= 128
    return tile, (hw % tile) != 0


# ----------------------------------------------------------------------------
# Public wrapper
# ----------------------------------------------------------------------------
def channel_attention(x, w1, w2, *, block_budget_bytes=8 * _MIB):
    """Forward pass of ChannelAttention.

    x : (N, C, H, W)
    w1: Conv2d(C, C//ratio, 1, bias=False) weight, shape (C//ratio, C, 1, 1) (or 2D)
    w2: Conv2d(C//ratio, C, 1, bias=False) weight, shape (C, C//ratio, 1, 1) (or 2D)
    Returns the attention map of shape (N, C, 1, 1) in x.dtype.
    """
    n, c, h, w = x.shape
    hidden = w1.shape[0]
    w1m = jnp.asarray(w1).reshape(hidden, -1)                # (hidden, C)
    w2m = jnp.asarray(w2).reshape(c, -1)                     # (C, hidden)
    assert w1m.shape == (hidden, c) and w2m.shape == (c, hidden)

    hw = h * w
    x3 = x.reshape(n, c, hw)                                 # free reshape, NCHW order
    itemsize = jnp.dtype(x.dtype).itemsize
    f32_sample_bytes = c * hw * 4                            # budget in f32 bytes

    use_tiling = (hw >= 256) and (f32_sample_bytes > block_budget_bytes)

    if not use_tiling:
        # ---------------- Regime A: single spatial tile, Nb samples per step ----
        cap = max(1, block_budget_bytes // max(1, f32_sample_bytes))
        nb = 1
        for d in range(min(n, cap), 0, -1):
            if n % d == 0:
                nb = d
                break

        block_bytes = nb * c * hw * itemsize
        need = 2 * block_bytes + nb * c * hw * 4 + 2 * _MIB  # 2x buffered + f32 temp
        vmem_limit = int(min(max(need, 16 * _MIB), 48 * _MIB))

        cost = pl.CostEstimate(
            flops=int(2 * n * c * hw + 4 * n * c * hidden),
            transcendentals=int(n * c),
            bytes_accessed=int(n * c * hw * itemsize + n * c * itemsize
                               + 2 * c * hidden * 4),
        )

        kernel = functools.partial(_ca_single_tile_kernel, inv_hw=1.0 / hw)
        out = pl.pallas_call(
            kernel,
            out_shape=jax.ShapeDtypeStruct((n, c, 1), x.dtype),
            grid_spec=pltpu.PrefetchScalarGridSpec(
                num_scalar_prefetch=0,
                grid=(n // nb,),
                in_specs=[
                    pl.BlockSpec((nb, c, hw), lambda b: (b, 0, 0)),
                    pl.BlockSpec((c, hidden), lambda b: (0, 0)),   # W1^T
                    pl.BlockSpec((hidden, c), lambda b: (0, 0)),   # W2^T
                ],
                out_specs=pl.BlockSpec((nb, c, 1), lambda b: (b, 0, 0)),
            ),
            compiler_params=pltpu.CompilerParams(
                dimension_semantics=("parallel",),
                vmem_limit_bytes=vmem_limit),
            cost_estimate=cost,
        )(x3, w1m.T, w2m.T)
        return out.reshape(n, c, 1, 1)

    # -------------------- Regime B: spatial tiling + accumulators ---------------
    tile_hw, mask_tail = _pick_spatial_tile(hw, c, block_budget_bytes)
    k_tiles = pl.cdiv(hw, tile_hw)

    block_bytes = c * tile_hw * itemsize
    need = 2 * block_bytes + c * tile_hw * 4 + 2 * _MIB
    vmem_limit = int(min(max(need, 16 * _MIB), 48 * _MIB))

    cost = pl.CostEstimate(
        flops=int(2 * n * c * hw + 4 * n * c * hidden),
        transcendentals=int(n * c),
        bytes_accessed=int(n * c * hw * itemsize + n * c * itemsize
                           + 2 * c * hidden * 4),
    )

    kernel = functools.partial(_ca_tiled_kernel, hw=hw, tile_hw=tile_hw,
                               mask_tail=mask_tail)
    out = pl.pallas_call(
        kernel,
        out_shape=jax.ShapeDtypeStruct((n, c, 1), x.dtype),
        grid_spec=pltpu.PrefetchScalarGridSpec(
            num_scalar_prefetch=0,
            grid=(n, k_tiles),
            in_specs=[
                pl.BlockSpec((1, c, tile_hw), lambda b, k: (b, 0, k)),
                pl.BlockSpec((hidden, c), lambda b, k: (0, 0)),
                pl.BlockSpec((c, hidden), lambda b, k: (0, 0)),
            ],
            out_specs=pl.BlockSpec((1, c, 1), lambda b, k: (b, 0, 0)),
            scratch_shapes=[
                pltpu.VMEM((c, 1), jnp.float32),             # per-channel running sum
                pltpu.VMEM((c, 1), jnp.float32),             # per-channel running max
            ],
        ),
        compiler_params=pltpu.CompilerParams(
            dimension_semantics=("parallel", "arbitrary"),
            vmem_limit_bytes=vmem_limit),
        cost_estimate=cost,
    )(x3, w1m, w2m)
    return out.reshape(n, c, 1, 1)


# ----------------------------------------------------------------------------
# Pure-JAX reference
# ----------------------------------------------------------------------------
def _reference(x, w1, w2):
    n, c, _, _ = x.shape
    hidden = w1.shape[0]
    w1m = jnp.asarray(w1).reshape(hidden, c)
    w2m = jnp.asarray(w2).reshape(c, hidden)
    avg = jnp.mean(x, axis=(2, 3))                           # (N, C)
    mx = jnp.max(x, axis=(2, 3))                             # (N, C)

    def mlp(v):
        return jnp.maximum(v @ w1m.T, 0.0) @ w2m.T

    y = mlp(avg) + mlp(mx)
    return (1.0 / (1.0 + jnp.exp(-y))).reshape(n, c, 1, 1)


if __name__ == "__main__":
    key = jax.random.PRNGKey(0)
    k1, k2, k3, k4, k5 = jax.random.split(key, 5)

    # ratio=8 requires in_planes >= 8; small but valid configuration.
    N, C, H, W = 2, 32, 16, 16
    ratio = 8
    hidden = C // ratio

    x = jax.random.normal(k1, (N, C, H, W), dtype=jnp.float32)
    # PyTorch init is xavier_normal_(gain=0.02); larger deterministic scale here so
    # the sigmoid output is non-trivial for the correctness check.
    w1 = 0.5 * jax.random.normal(k2, (hidden, C, 1, 1), dtype=jnp.float32)
    w2 = 0.5 * jax.random.normal(k3, (C, hidden, 1, 1), dtype=jnp.float32)

    # Regime A (single spatial tile, batch-blocked) — the default path at this shape.
    out = jax.block_until_ready(channel_attention(x, w1, w2))
    ref = _reference(x, w1, w2)
    assert out.shape == (N, C, 1, 1)
    assert jnp.allclose(out, ref, atol=1e-4, rtol=1e-4), "regime A mismatch"

    # Regime B with last-tile-only masking, forced via a tiny block budget
    # (H*W = 288 is not a multiple of the 128-lane tile).
    xb = jax.random.normal(k4, (N, C, 16, 18), dtype=jnp.float32)
    outb = jax.block_until_ready(
        channel_attention(xb, w1, w2, block_budget_bytes=16 * 1024))
    assert jnp.allclose(outb, _reference(xb, w1, w2), atol=1e-4, rtol=1e-4), \
        "regime B (masked) mismatch"

    # Regime B without masking (H*W divisible by the tile), also forced.
    xc = jax.random.normal(k5, (1, C, 16, 16), dtype=jnp.float32)
    outc = jax.block_until_ready(
        channel_attention(xc, w1, w2, block_budget_bytes=16 * 1024))
    assert jnp.allclose(outc, _reference(xc, w1, w2), atol=1e-4, rtol=1e-4), \
        "regime B (unmasked) mismatch"

    print("KERNEL_OK")
</pallas_src>

<mosaic_0001>
module attributes {stable_mosaic.version = 11 : i64} {
  func.func @_ca_single_tile_kernel(%arg0: i32, %arg1: memref<2x32x256xf32, #tpu.memory_space<vmem>>, %arg2: memref<32x4xf32, #tpu.memory_space<vmem>>, %arg3: memref<4x32xf32, #tpu.memory_space<vmem>>, %arg4: memref<2x32x1xf32, #tpu.memory_space<vmem>>) attributes {dimension_semantics = [#tpu.dimension_semantics<parallel>], iteration_bounds = array<i64: 1>, scalar_prefetch = 0 : i64, scratch_operands = 0 : i64, tpu.core_type = #tpu.core_type<tc>, window_params = [{transform_indices = @transform_0, window_bounds = array<i64: 2, 32, 256>}, {pipeline_mode = #tpu.pipeline_mode<synchronous>, transform_indices = @transform_1, window_bounds = array<i64: 32, 4>}, {pipeline_mode = #tpu.pipeline_mode<synchronous>, transform_indices = @transform_2, window_bounds = array<i64: 4, 32>}, {transform_indices = @transform_3, window_bounds = array<i64: 2, 32, 1>}]} {
    %c0 = arith.constant 0 : index
    %c0_0 = arith.constant 0 : index
    %c0_1 = arith.constant 0 : index
    %0 = vector.load %arg1[%c0, %c0_0, %c0_1] : memref<2x32x256xf32, #tpu.memory_space<vmem>>, vector<2x32x256xf32>
    %cst = arith.constant dense<0.000000e+00> : vector<2x32xf32>
    %1 = vector.multi_reduction <add>, %0, %cst [2] : vector<2x32x256xf32> to vector<2x32xf32>
    %cst_2 = arith.constant 3.906250e-03 : f32
    %2 = vector.broadcast %cst_2 : f32 to vector<2x32xf32>
    %3 = arith.mulf %1, %2 : vector<2x32xf32>
    %cst_3 = arith.constant dense<0xFF800000> : vector<2x32xf32>
    %4 = vector.multi_reduction <maximumf>, %0, %cst_3 [2] : vector<2x32x256xf32> to vector<2x32xf32>
    %c0_4 = arith.constant 0 : index
    %c0_5 = arith.constant 0 : index
    %5 = vector.load %arg2[%c0_4, %c0_5] : memref<32x4xf32, #tpu.memory_space<vmem>>, vector<32x4xf32>
    %c0_6 = arith.constant 0 : index
    %c0_7 = arith.constant 0 : index
    %6 = vector.load %arg3[%c0_6, %c0_7] : memref<4x32xf32, #tpu.memory_space<vmem>>, vector<4x32xf32>
    %cst_8 = arith.constant dense<0.000000e+00> : vector<2x4xf32>
    %7 = tpu.matmul %3, %5, %cst_8 {dimension_numbers = #tpu.dot_dimension_numbers<[1], [0], [0], [1], [0, 0, 1, 1], [], []>} : vector<2x32xf32>, vector<32x4xf32>, vector<2x4xf32> -> vector<2x4xf32>
    %cst_9 = arith.constant 0.000000e+00 : f32
    %8 = vector.broadcast %cst_9 : f32 to vector<2x4xf32>
    %9 = arith.maximumf %7, %8 : vector<2x4xf32>
    %cst_10 = arith.constant dense<0.000000e+00> : vector<2x4xf32>
    %10 = tpu.matmul %4, %5, %cst_10 {dimension_numbers = #tpu.dot_dimension_numbers<[1], [0], [0], [1], [0, 0, 1, 1], [], []>} : vector<2x32xf32>, vector<32x4xf32>, vector<2x4xf32> -> vector<2x4xf32>
    %cst_11 = arith.constant 0.000000e+00 : f32
    %11 = vector.broadcast %cst_11 : f32 to vector<2x4xf32>
    %12 = arith.maximumf %10, %11 : vector<2x4xf32>
    %13 = arith.addf %9, %12 : vector<2x4xf32>
    %cst_12 = arith.constant dense<0.000000e+00> : vector<2x32xf32>
    %14 = tpu.matmul %13, %6, %cst_12 {dimension_numbers = #tpu.dot_dimension_numbers<[1], [0], [0], [1], [0, 0, 1, 1], [], []>} : vector<2x4xf32>, vector<4x32xf32>, vector<2x32xf32> -> vector<2x32xf32>
    %cst_13 = arith.constant 0.000000e+00 : f32
    %15 = vector.broadcast %cst_13 : f32 to vector<2x32xf32>
    %16 = arith.subf %15, %14 : vector<2x32xf32>
    %17 = math.exp %16 : vector<2x32xf32>
    %cst_14 = arith.constant 1.000000e+00 : f32
    %18 = vector.broadcast %cst_14 : f32 to vector<2x32xf32>
    %19 = arith.addf %18, %17 : vector<2x32xf32>
    %cst_15 = arith.constant 1.000000e+00 : f32
    %20 = vector.broadcast %cst_15 : f32 to vector<2x32xf32>
    %21 = arith.divf %20, %19 : vector<2x32xf32>
    %22 = vector.shape_cast %21 : vector<2x32xf32> to vector<2x32x1xf32>
    %c0_16 = arith.constant 0 : index
    %c0_17 = arith.constant 0 : index
    %c0_18 = arith.constant 0 : index
    %23 = vector.load %arg4[%c0_16, %c0_17, %c0_18] : memref<2x32x1xf32, #tpu.memory_space<vmem>>, vector<2x32x1xf32>
    tpu.vector_store %arg4[%c0_16, %c0_17, %c0_18], %22 {strides = array<i32>} : memref<2x32x1xf32, #tpu.memory_space<vmem>>, vector<2x32x1xf32>,
    return
  }
  func.func @transform_0(%arg0: i32) -> (i32, i32, i32) {
    %c0_i32 = arith.constant 0 : i32
    %c0_i32_0 = arith.constant 0 : i32
    %c0_i32_1 = arith.constant 0 : i32
    return %arg0, %c0_i32, %c0_i32_0 : i32, i32, i32
  }
  func.func @transform_1(%arg0: i32) -> (i32, i32) {
    %c0_i32 = arith.constant 0 : i32
    %c0_i32_0 = arith.constant 0 : i32
    %c0_i32_1 = arith.constant 0 : i32
    return %c0_i32, %c0_i32_0 : i32, i32
  }
  func.func @transform_2(%arg0: i32) -> (i32, i32) {
    %c0_i32 = arith.constant 0 : i32
    %c0_i32_0 = arith.constant 0 : i32
    %c0_i32_1 = arith.constant 0 : i32
    return %c0_i32, %c0_i32_0 : i32, i32
  }
  func.func @transform_3(%arg0: i32) -> (i32, i32, i32) {
    %c0_i32 = arith.constant 0 : i32
    %c0_i32_0 = arith.constant 0 : i32
    %c0_i32_1 = arith.constant 0 : i32
    return %arg0, %c0_i32, %c0_i32_0 : i32, i32, i32
  }
}

</mosaic_0001>

<bundles_post_ra>
// kernel: tpu_custom_call.1
= control target key start
LH: loop header
LB: loop body
LE: loop exit
PB: predicated region body
PF: predicated region fallthrough
CT: control target
= control target key end

     0   :  { %8 = vsyncpa [#allocation3], 0  ;;  %s366_s15 = smov [#allocation2]   ;;  %s367_s17 = smov 256   ;;  %s457_s0 = inlined_call_operand.hbm [shape: f32[2,32,256], index: 0, kind: input, shape index: {}]   ;;  %s458_s1 = inlined_call_operand.vmem [shape: f32[32,4], index: 1, kind: input, shape index: {}]   ;;  %s459_s2 = inlined_call_operand.vmem [shape: f32[4,32], index: 2, kind: input, shape index: {}]   ;;  %s460_s3 = inlined_call_operand.vmem [shape: f32[2,32,1], index: 3, kind: output, shape index: {}]  }
   0x1   :  { %s13_s14 = sshll.u32 %s457_s0, 4  ;;  %s15_s16 = sshll.u32 %s366_s15, 4  ;;  %s14_s14 = int_to_ptr.hbm [resolvable:$true] %s13_s14  ;;  %s16_s16 = int_to_ptr.vmem [resolvable:$true] %s15_s16 }
   0x2   :  { %s368_s18 = smov 16  }
   0x3   :  { %21 = dma.hbm_to_vmem [thread:$0]  %s14_s14, 2048, %s16_s16, [#allocation3], %s367_s17, %s367_s17, %s368_s18  }
   0x4   :  { %364 = dma.done.wait [#allocation3], 2048  }
   0x5   :  { %365 = vsyncadd [#allocation3], 4294965248  ;;  %v38_v0 = vld [vmem:[#allocation2 + $0x40] sm:$0xff]  ;;  %v39_v1 = vld [vmem:[#allocation2 + $0x48] sm:$0xff]  ;;  %v115_v39 = vlaneseq  ;;  %vm120_vm0 = vcmask 130112   ;;  %vm124_vm1 = vcmask 195712  }
   0x6   :  { %v30_v2 = vld [vmem:[#allocation2] sm:$0xff]  ;;  %v58_v3 = vadd.f32 %v39_v1, %v38_v0  ;;  %v31_v4 = vld [vmem:[#allocation2 + $0x8] sm:$0xff]  ;;  %v40_v9 = vld [vmem:[#allocation2 + $0x50] sm:$0xff]  ;;  %v90_v25 = vmax.f32 %v38_v0, %v39_v1  ;;  %vm128_vm2 = vcmask 261312   ;;  %vm137_vm3 = vcmask 1041409  }
   0x7   :  { %v34_v5 = vld [vmem:[#allocation2 + $0x20] sm:$0xff]  ;;  %v35_v6 = vld [vmem:[#allocation2 + $0x28] sm:$0xff]  ;;  %v46_v7 = vadd.f32 %v31_v4, %v30_v2  ;;  %v41_v10 = vld [vmem:[#allocation2 + $0x58] sm:$0xff]  ;;  %v78_v24 = vmax.f32 %v30_v2, %v31_v4  ;;  %v116_v40 = vand.u32 127, %v115_v39  ;;  %vm139_vm4 = vcmask 261120  }
   0x8   :  { %v52_v8 = vadd.f32 %v35_v6, %v34_v5  ;;  %59 = vadd.xlane.f32.xlu1 %v58_v3  ;;  %v32_v11 = vld [vmem:[#allocation2 + $0x10] sm:$0xff]  ;;  %v33_v12 = vld [vmem:[#allocation2 + $0x18] sm:$0xff]  ;;  %v42_v13 = vld [vmem:[#allocation2 + $0x60] sm:$0xff]  ;;  %v61_v15 = vadd.f32 %v41_v10, %v40_v9  ;;  %v93_v27 = vmax.f32 %v40_v9, %v41_v10  ;;  %v84_v29 = vmax.f32 %v34_v5, %v35_v6 }
   0x9   :  { %47 = vadd.xlane.f32.xlu0 %v46_v7  ;;  %v43_v14 = vld [vmem:[#allocation2 + $0x68] sm:$0xff]  ;;  %v49_v16 = vadd.f32 %v33_v12, %v32_v11  ;;  %v44_v18 = vld [vmem:[#allocation2 + $0x70] sm:$0xff]  ;;  %v45_v19 = vld [vmem:[#allocation2 + $0x78] sm:$0xff]  ;;  %v81_v26 = vmax.f32 %v32_v11, %v33_v12  ;;  %v118_v43 = vadd.s32 4294967288, %v116_v40  ;;  %v122_v49 = vadd.s32 4294967280, %v116_v40 }
   0xa   :  { %53 = vadd.xlane.f32.xlu2 %v52_v8  ;;  %v64_v17 = vadd.f32 %v43_v14, %v42_v13  ;;  %v36_v20 = vld [vmem:[#allocation2 + $0x30] sm:$0xff]  ;;  %v37_v21 = vld [vmem:[#allocation2 + $0x38] sm:$0xff]  ;;  %v67_v22 = vadd.f32 %v45_v19, %v44_v18  ;;  %v96_v28 = vmax.f32 %v42_v13, %v43_v14  ;;  %v99_v31 = vmax.f32 %v44_v18, %v45_v19  ;;  %v103_v34 = vld [vmem:[%s458_s1 + $0x8] sm:$0xff] }
   0xb   :  { %v55_v23 = vadd.f32 %v37_v21, %v36_v20  ;;  %v87_v30 = vmax.f32 %v36_v20, %v37_v21  ;;  %v105_v32 = vld [vmem:[%s458_s1 + $0x18] sm:$0xff]  ;;  %v104_v33 = vld [vmem:[%s458_s1 + $0x10] sm:$0xff]  ;;  %v102_v35 = vld [vmem:[%s458_s1] sm:$0xff]  ;;  %v126_v55 = vadd.s32 4294967272, %v116_v40  ;;  %vm214_vm5 = vcmask 1043456  }
   0xc   :  { %154 = vmatpush.msra.mxu0 %v105_v32  ;;  %200 = vmatpush.msra.mxu1 %v105_v32  ;;  %vm210_vm6 = vcmask 31744   ;;  %vm307_vm11 = vcmask 7168  }
   0xe   :  { %155 = vmatpush.msra.mxu0 %v104_v33  ;;  %201 = vmatpush.msra.mxu1 %v104_v33 }
  0x10   :  { %62 = vadd.xlane.f32.xlu1 %v61_v15  ;;  %156 = vmatpush.msra.mxu0 %v103_v34 }
  0x11   :  { %50 = vadd.xlane.f32.xlu0 %v49_v16  ;;  %202 = vmatpush.msra.mxu1 %v103_v34 }
  0x12   :  { %65 = vadd.xlane.f32.xlu2 %v64_v17  ;;  %157 = vmatpush.msra.mxu0 %v102_v35 }
  0x13   :  { %203 = vmatpush.msra.mxu1 %v102_v35 }
  0x18   :  { %68 = vadd.xlane.f32.xlu1 %v67_v22 }
  0x19   :  { %56 = vadd.xlane.f32.xlu0 %v55_v23 }
  0x1a   :  { %79 = vmax.xlane.f32.xlu2 %v78_v24 }
  0x20   :  { %91 = vmax.xlane.f32.xlu1 %v90_v25 }
  0x21   :  { %82 = vmax.xlane.f32.xlu0 %v81_v26 }
  0x22   :  { %94 = vmax.xlane.f32.xlu2 %v93_v27 }
  0x28   :  { %97 = vmax.xlane.f32.xlu1 %v96_v28 }
  0x29   :  { %85 = vmax.xlane.f32.xlu0 %v84_v29 }
  0x2a   :  { %88 = vmax.xlane.f32.xlu2 %v87_v30 }
  0x31   :  { %100 = vmax.xlane.f32.xlu0 %v99_v31  ;;  %v106_v31 = vld [vmem:[%s459_s2] sm:$0xf] }
  0x32   :  { %323 = vmatpush.msk.msra.mxu2 %vm214_vm5, %v106_v31 }
  0x7b   :  { %v60_v36 = vpop.xlane.xlu1 %59 }
  0x7c   :  { %v48_v37 = vpop.xlane.xlu0 %47  ;;  %v74_v42 = vmul.f32 0.00390625, %v60_v36 }
  0x7d   :  { %v54_v38 = vpop.xlane.xlu2 %53  ;;  %v70_v48 = vmul.f32 0.00390625, %v48_v37  ;;  %v259_v37 = vshrl.u32 %v115_v39, 7 }
  0x7e   :  { %v130_v51 = vperm.slane %v74_v42, %v116_v40  ;;  %v72_v52 = vmul.f32 0.00390625, %v54_v38 }
  0x7f   :  { %v117_v56 = vperm.slane %v70_v48, %v116_v40  ;;  %328 = vset.pattern.permute.xlu1 %v259_v37  ;;  %v272_v38 = vadd.s32 16, %v259_v37 }
  0x80   :  { %v123_v59 = vperm.slane %v72_v52, %v122_v49 }
  0x81   :  { %330 = vset.pattern.permute.xlu0 %v272_v38 }
  0x83   :  { %v63_v41 = vpop.xlane.xlu1 %62 }
  0x84   :  { %v75_v44 = vmul.f32 0.00390625, %v63_v41  ;;  %v51_v45 = vpop.xlane.xlu0 %50 }
  0x85   :  { %v66_v46 = vpop.xlane.xlu2 %65  ;;  %v71_v47 = vmul.f32 0.00390625, %v51_v45 }
  0x86   :  { %v76_v50 = vmul.f32 0.00390625, %v66_v46  ;;  %v131_v53 = vperm.slane %v75_v44, %v118_v43 }
  0x87   :  { %v119_v54 = vperm.slane %v71_v47, %v118_v43 }
  0x88   :  { %v133_v57 = vperm.slane %v76_v50, %v122_v49  ;;  %v132_v60 = vsel %vm120_vm0, %v131_v53, %v130_v51 }
  0x89   :  { %v121_v0 = vsel %vm120_vm0, %v119_v54, %v117_v56  ;;  %v278_v56 = vadd.s32 24, %v259_v37 }
  0x8a   :  { %v134_v4 = vsel %vm124_vm1, %v133_v57, %v132_v60  ;;  %v125_v5 = vsel %vm124_vm1, %v123_v59, %v121_v0 }
  0x8b   :  { %v69_v58 = vpop.xlane.xlu1 %68 }
  0x8c   :  { %v77_v61 = vmul.f32 0.00390625, %v69_v58  ;;  %v57_v62 = vpop.xlane.xlu0 %56 }
  0x8d   :  { %v80_v63 = vpop.xlane.xlu2 %79  ;;  %v73_v1 = vmul.f32 0.00390625, %v57_v62 }
  0x8e   :  { %v135_v2 = vperm.slane %v77_v61, %v126_v55  ;;  %v171_v13 = vperm.slane %v80_v63, %v116_v40 }
  0x8f   :  { %v127_v3 = vperm.slane %v73_v1, %v126_v55 }
  0x90   :  { %v136_v6 = vsel %vm128_vm2, %v135_v2, %v134_v4 }
  0x91   :  { %v129_v7 = vsel %vm128_vm2, %v127_v3, %v125_v5 }
  0x92   :  { %v138_v8 = vsel %vm137_vm3, %v136_v6, %v129_v7 }
  0x93   :  { %321 = vmatmul.msk.f32.vlgmr.msra.gmra.mxu0 %vm139_vm4, %v138_v8  ;;  %v92_v10 = vpop.xlane.xlu1 %91 }
  0x94   :  { %v83_v9 = vpop.xlane.xlu0 %82  ;;  %v178_v14 = vperm.slane %v92_v10, %v116_v40  ;;  %v266_v40 = vadd.s32 8, %v259_v37 }
  0x95   :  { %v95_v11 = vpop.xlane.xlu2 %94  ;;  %v172_v15 = vperm.slane %v83_v9, %v118_v43 }
  0x96   :  { %v179_v16 = vperm.slane %v95_v11, %v118_v43  ;;  %329 = vset.pattern.permute.xlu2 %v266_v40 }
  0x97   :  { %v173_v21 = vsel %vm120_vm0, %v172_v15, %v171_v13 }
  0x98   :  { %v180_v22 = vsel %vm120_vm0, %v179_v16, %v178_v14 }
  0x9b   :  { %v98_v17 = vpop.xlane.xlu1 %97 }
  0x9c   :  { %v86_v12 = vpop.xlane.xlu0 %85  ;;  %v181_v20 = vperm.slane %v98_v17, %v122_v49 }
  0x9d   :  { %v174_v18 = vperm.slane %v86_v12, %v122_v49  ;;  %v89_v19 = vpop.xlane.xlu2 %88 }
  0x9e   :  { %v176_v23 = vperm.slane %v89_v19, %v126_v55  ;;  %v182_v27 = vsel %vm124_vm1, %v181_v20, %v180_v22 }
  0x9f   :  { %v175_v24 = vsel %vm124_vm1, %v174_v18, %v173_v21 }
  0xa0   :  { %v177_v28 = vsel %vm128_vm2, %v176_v23, %v175_v24 }
  0xa4   :  { %v101_v25 = vpop.xlane.xlu0 %100 }
  0xa5   :  { %v183_v26 = vperm.slane %v101_v25, %v126_v55 }
  0xa7   :  { %v184_v29 = vsel %vm128_vm2, %v183_v26, %v182_v27 }
  0xa8   :  { %v185_v30 = vsel %vm137_vm3, %v184_v29, %v177_v28 }
  0xa9   :  { %322 = vmatmul.msk.f32.vlgmr.msra.gmra.mxu1 %vm139_vm4, %v185_v30 }
 0x110   :  { %v159_v32 = vpop.f32.mrf.mxu0 }
 0x111   :  { %v162_v34 = vmax.f32 %v159_v32, 0.0 }
 0x126   :  { %v205_v33 = vpop.f32.mrf.mxu1 }
 0x127   :  { %v208_v35 = vmax.f32 %v205_v33, 0.0 }
 0x129   :  { %v209_v36 = vadd.f32 %v208_v35, %v162_v34 }
 0x12b   :  { %324 = vmatmul.msk.f32.vlgmr.msra.gmra.mxu2 %vm210_vm6, %v209_v36 }
 0x1ae   :  { %v235_v41 = vpop.f32.mrf.mxu2 }
 0x1af   :  { %v238_v42 = vsub.f32 0.0, %v235_v41 }
 0x1b1   :  { %v239_v43 = vmul.f32 1.442695, %v238_v42 }
 0x1b3   :  { %336 = vpow2.f32 %v239_v43 }
 0x1b9   :  { %v337_v44 = vpop.eup %336 }
 0x1ba   :  { %v241_v45 = vadd.f32 1.0, %v337_v44 }
 0x1bc   :  { %338 = vrcp.f32 %v241_v45  ;;  %v253_v49 = vand.u32 2147483648, %v241_v45  ;;  %v251_v51 = vand.u32 2147483647, %v241_v45  ;;  %vm247_vm8 = vweird.f32 %v241_v45 }
 0x1be   :  { %v254_v52 = vor.u32 1.1754944e-38, %v253_v49  ;;  %vm252_vm10 = vcmp.eq.f32.partialorder %v251_v51, 8.507059e+37 }
 0x1c2   :  { %v339_v46 = vpop.eup %338 }
 0x1c3   :  { %v243_v47 = vmul.f32 %v339_v46, %v241_v45  ;;  %vm248_vm7 = vweird.f32 %v339_v46 }
 0x1c4   :  { %vm249_vm9 = vmor %vm247_vm8, %vm248_vm7 }
 0x1c5   :  { %v244_v48 = vsub.f32 1.0, %v243_v47 }
 0x1c7   :  { %v245_v50 = vmul.f32 %v339_v46, %v244_v48 }
 0x1c9   :  { %v246_v39 = vadd.f32 %v339_v46, %v245_v50 }
 0x1cb   :  { %v250_v53 = vsel %vm249_vm9, %v339_v46, %v246_v39 }
 0x1cc   :  { %v255_v54 = vsel %vm252_vm10, %v254_v52, %v250_v53 }
 0x1cd   :  { %v257_v55 = vperm.slane %v255_v54, 0  ;;  %v282_v57 = vperm.slane %v255_v54, 1 }
 0x1cf   :  { %274 = vperm.xlu0 %330, %v257_v55   ;;  %268 = vperm.xlu2 %329, %v257_v55  }
 0x1d0   :  { %262 = vperm.xlu1 %328, %v257_v55  }
 0x1d7   :  { %331 = vset.pattern.permute.xlu2 %v278_v56  ;;  %335 = vset.pattern.permute.xlu0 %v278_v56 }
 0x1d8   :  { %287 = vperm.xlu1 %328, %v282_v57  }
 0x1df   :  { %280 = vperm.xlu2 %331, %v257_v55  }
 0x1e0   :  { %333 = vset.pattern.permute.xlu1 %v272_v38 }
 0x1e7   :  { %332 = vset.pattern.permute.xlu2 %v266_v40 }
 0x1e8   :  { %299 = vperm.xlu1 %333, %v282_v57  }
 0x1ef   :  { %293 = vperm.xlu2 %332, %v282_v57  }
 0x1f7   :  { %334 = vset.pattern.permute.xlu2 %v278_v56 }
 0x1ff   :  { %305 = vperm.xlu2 %334, %v282_v57  }
 0x229   :  { %v269_v58 = vpop.permute.xlu2 %268 }
 0x22a   :  { %309 = vst.msk [vmem:[%s460_s3 + $0x8] sm:$0xff] %vm307_vm11, %v269_v58 }
 0x239   :  { %v281_v59 = vpop.permute.xlu2 %280 }
 0x23a   :  { %311 = vst.msk [vmem:[%s460_s3 + $0x18] sm:$0xff] %vm307_vm11, %v281_v59 }
 0x241   :  { %v275_v60 = vpop.permute.xlu0 %274 }
 0x242   :  { %310 = vst.msk [vmem:[%s460_s3 + $0x10] sm:$0xff] %vm307_vm11, %v275_v60  ;;  %v263_v61 = vpop.permute.xlu1 %262 }
 0x243   :  { %308 = vst.msk [vmem:[%s460_s3] sm:$0xff] %vm307_vm11, %v263_v61 }
 0x249   :  { %v294_v62 = vpop.permute.xlu2 %293 }
 0x24a   :  { %313 = vst.msk [vmem:[%s460_s3 + $0x28] sm:$0xff] %vm307_vm11, %v294_v62  ;;  %v288_v63 = vpop.permute.xlu1 %287 }
 0x24b   :  { %312 = vst.msk [vmem:[%s460_s3 + $0x20] sm:$0xff] %vm307_vm11, %v288_v63 }
 0x259   :  { %v306_v0 = vpop.permute.xlu2 %305 }
 0x25a   :  { %315 = vst.msk [vmem:[%s460_s3 + $0x38] sm:$0xff] %vm307_vm11, %v306_v0  ;;  %v300_v1 = vpop.permute.xlu1 %299 }
 0x25b   :  { %314 = vst.msk [vmem:[%s460_s3 + $0x30] sm:$0xff] %vm307_vm11, %v300_v1 }
 0x25c   :  { %320 = vsyncpa [#allocation3], 1 }

</bundles_post_ra>
